<compile_context>
chip_gen: v5e
topology: v5e:2x2
jax: 0.10.0
libtpu: 0.0.40
codegen_flags: <defaults>
</compile_context>

<pallas_src>
import jax
import jax.numpy as jnp
from jax.experimental import pallas as pl
from jax.experimental.pallas import tpu as pltpu

# Mirrors kelp consts.data.EPS used by the reference module.
EPS = 1e-10


def _minmax_kernel(x_ref, min_ref, max_ref, inv_ref, o_ref):
    x = x_ref[...]                       # (tile_r, tile_l)
    mn = min_ref[...]                    # (tile_r, 1)  -> broadcast along lanes
    mx = max_ref[...]                    # (tile_r, 1)
    inv = inv_ref[...]                   # (tile_r, 1)  f32, 1/(max-min+eps), hoisted
    xc = jnp.clip(x, mn, mx)             # per-channel clamp (x.dtype, like torch)
    o_ref[...] = ((xc - mn) * inv).astype(o_ref.dtype)


def _round_up(v: int, m: int) -> int:
    return ((v + m - 1) // m) * m


def min_max_normalize(x: jax.Array,
                      min_vals: jax.Array,
                      max_vals: jax.Array,
                      *,
                      eps: float = EPS,
                      target_block_bytes: int = 8 << 20) -> jax.Array:
    """JAX/Pallas equivalent of MinMaxNormalize.forward.

    x:        (N, C, H, W) float array.
    min_vals: (C,) per-channel minimums.
    max_vals: (C,) per-channel maximums.
    returns:  (N, C, H, W) normalized array.
    """
    N, C, H, W = x.shape
    R = N * C
    L = H * W

    # Lane-dense 2D view: rows are (batch, channel) pairs, lanes are spatial pixels.
    x2d = x.reshape(R, L)

    itemsize = x2d.dtype.itemsize
    # dtype-native sublane packing multiple: f32 -> 8, bf16 -> 16, int8/fp8 -> 32.
    sub = {4: 8, 2: 16, 1: 32}.get(itemsize, 8)

    # --- Tile sizing (bounded VMEM for any image size) -------------------------
    if sub * L * itemsize <= target_block_bytes:
        # Full lane extent fits: tile rows only.
        tile_l = L
        tile_r = max(sub, (target_block_bytes // max(1, L * itemsize)) // sub * sub)
        if tile_r >= R:
            if R >= 2 * sub:
                # Keep >=2 row tiles so the 'parallel' axis can span both v7x TCs.
                tile_r = _round_up(pl.cdiv(R, 2), sub)
            else:
                tile_r = R          # single full-rows block (full-dim block is legal)
    else:
        # One sublane group of rows already exceeds the target: tile the lane dim.
        tile_r = sub if R >= sub else R
        tile_l = max(128, (target_block_bytes // max(1, sub * itemsize)) // 128 * 128)

    n_row = pl.cdiv(R, tile_r)
    n_lane = pl.cdiv(L, tile_l)

    # --- Tiny per-row columns (padded to the row-grid extent; negligible bytes) ---
    mn_rows = jnp.broadcast_to(min_vals.astype(x.dtype)[None, :], (N, C)).reshape(R, 1)
    mx_rows = jnp.broadcast_to(max_vals.astype(x.dtype)[None, :], (N, C)).reshape(R, 1)
    inv_rows = jnp.broadcast_to(
        (1.0 / (max_vals.astype(jnp.float32) - min_vals.astype(jnp.float32) + eps))[None, :],
        (N, C)).reshape(R, 1)

    rows_extent = n_row * tile_r
    if rows_extent != R:
        pad = rows_extent - R
        mn_rows = jnp.pad(mn_rows, ((0, pad), (0, 0)), constant_values=0.0)
        mx_rows = jnp.pad(mx_rows, ((0, pad), (0, 0)), constant_values=1.0)
        inv_rows = jnp.pad(inv_rows, ((0, pad), (0, 0)), constant_values=1.0)

    # Double-buffered input + output blocks + slack for the tiny columns.
    block_bytes = tile_r * tile_l * itemsize
    vmem_limit = int(min(max(4 * block_bytes + (4 << 20), 32 << 20), 48 << 20))

    out2d = pl.pallas_call(
        _minmax_kernel,
        out_shape=jax.ShapeDtypeStruct((R, L), x2d.dtype),
        grid=(n_row, n_lane),
        in_specs=[
            pl.BlockSpec((tile_r, tile_l), lambda i, j: (i, j)),   # image tile
            pl.BlockSpec((tile_r, 1), lambda i, j: (i, 0)),        # per-row mins
            pl.BlockSpec((tile_r, 1), lambda i, j: (i, 0)),        # per-row maxs
            pl.BlockSpec((tile_r, 1), lambda i, j: (i, 0)),        # per-row 1/denom (f32)
        ],
        out_specs=pl.BlockSpec((tile_r, tile_l), lambda i, j: (i, j)),
        compiler_params=pltpu.CompilerParams(
            dimension_semantics=("parallel", "parallel"),
            vmem_limit_bytes=vmem_limit,
        ),
    )(x2d, mn_rows, mx_rows, inv_rows)

    return out2d.reshape(N, C, H, W)


def _reference(x, min_vals, max_vals, eps=EPS):
    C = x.shape[1]
    mins = min_vals.reshape(1, C, 1, 1).astype(x.dtype)
    maxs = max_vals.reshape(1, C, 1, 1).astype(x.dtype)
    r = jnp.clip(x, mins, maxs)
    return (r - mins) / (maxs - mins + eps)


if __name__ == "__main__":
    key = jax.random.PRNGKey(0)
    kx, kmin, kmax, kx2 = jax.random.split(key, 4)

    # Main small case (divisible tiles, single block).
    N, C, H, W = 2, 4, 16, 16
    x = jax.random.normal(kx, (N, C, H, W), dtype=jnp.float32)
    min_vals = -jnp.abs(jax.random.normal(kmin, (C,), dtype=jnp.float32)) - 0.1
    max_vals = jnp.abs(jax.random.normal(kmax, (C,), dtype=jnp.float32)) + 0.1

    out = jax.block_until_ready(min_max_normalize(x, min_vals, max_vals))
    ref = _reference(x, min_vals, max_vals)
    assert out.shape == x.shape
    assert jnp.allclose(out, ref, rtol=1e-5, atol=1e-6), "MinMaxNormalize mismatch (main case)"

    # Ragged-grid case (R % tile_r != 0, non-128 lane extent) exercising the
    # no-pad / dropped-OOB-write path with a tiny forced block size.
    N2, C2, H2, W2 = 3, 5, 10, 12
    x2 = jax.random.normal(kx2, (N2, C2, H2, W2), dtype=jnp.float32)
    mn2 = -jnp.abs(jax.random.normal(kmin, (C2,), dtype=jnp.float32)) - 0.1
    mx2 = jnp.abs(jax.random.normal(kmax, (C2,), dtype=jnp.float32)) + 0.1
    out2 = jax.block_until_ready(
        min_max_normalize(x2, mn2, mx2, target_block_bytes=4096))
    ref2 = _reference(x2, mn2, mx2)
    assert jnp.allclose(out2, ref2, rtol=1e-5, atol=1e-6), "MinMaxNormalize mismatch (ragged case)"

    print("KERNEL_OK")
</pallas_src>

<mosaic_0001>
module attributes {stable_mosaic.version = 11 : i64} {
  func.func @_minmax_kernel(%arg0: i32, %arg1: i32, %arg2: memref<8x256xf32, #tpu.memory_space<vmem>>, %arg3: memref<8x1xf32, #tpu.memory_space<vmem>>, %arg4: memref<8x1xf32, #tpu.memory_space<vmem>>, %arg5: memref<8x1xf32, #tpu.memory_space<vmem>>, %arg6: memref<8x256xf32, #tpu.memory_space<vmem>>) attributes {dimension_semantics = [#tpu.dimension_semantics<parallel>, #tpu.dimension_semantics<parallel>], iteration_bounds = array<i64: 1, 1>, scalar_prefetch = 0 : i64, scratch_operands = 0 : i64, tpu.core_type = #tpu.core_type<tc>, window_params = [{transform_indices = @transform_0, window_bounds = array<i64: 8, 256>}, {transform_indices = @transform_1, window_bounds = array<i64: 8, 1>}, {transform_indices = @transform_2, window_bounds = array<i64: 8, 1>}, {transform_indices = @transform_3, window_bounds = array<i64: 8, 1>}, {transform_indices = @transform_4, window_bounds = array<i64: 8, 256>}]} {
    %c0 = arith.constant 0 : index
    %c0_0 = arith.constant 0 : index
    %0 = vector.load %arg2[%c0, %c0_0] : memref<8x256xf32, #tpu.memory_space<vmem>>, vector<8x256xf32>
    %c0_1 = arith.constant 0 : index
    %c0_2 = arith.constant 0 : index
    %1 = vector.load %arg3[%c0_1, %c0_2] : memref<8x1xf32, #tpu.memory_space<vmem>>, vector<8x1xf32>
    %c0_3 = arith.constant 0 : index
    %c0_4 = arith.constant 0 : index
    %2 = vector.load %arg4[%c0_3, %c0_4] : memref<8x1xf32, #tpu.memory_space<vmem>>, vector<8x1xf32>
    %c0_5 = arith.constant 0 : index
    %c0_6 = arith.constant 0 : index
    %3 = vector.load %arg5[%c0_5, %c0_6] : memref<8x1xf32, #tpu.memory_space<vmem>>, vector<8x1xf32>
    %4 = vector.broadcast %1 : vector<8x1xf32> to vector<8x256xf32>
    %5 = arith.maximumf %4, %0 : vector<8x256xf32>
    %6 = vector.broadcast %2 : vector<8x1xf32> to vector<8x256xf32>
    %7 = arith.minimumf %6, %5 : vector<8x256xf32>
    %8 = vector.broadcast %1 : vector<8x1xf32> to vector<8x256xf32>
    %9 = arith.subf %7, %8 : vector<8x256xf32>
    %10 = vector.broadcast %3 : vector<8x1xf32> to vector<8x256xf32>
    %11 = arith.mulf %9, %10 : vector<8x256xf32>
    %c0_7 = arith.constant 0 : index
    %c0_8 = arith.constant 0 : index
    %12 = vector.load %arg6[%c0_7, %c0_8] : memref<8x256xf32, #tpu.memory_space<vmem>>, vector<8x256xf32>
    tpu.vector_store %arg6[%c0_7, %c0_8], %11 {strides = array<i32>} : memref<8x256xf32, #tpu.memory_space<vmem>>, vector<8x256xf32>,
    return
  }
  func.func @transform_0(%arg0: i32, %arg1: i32) -> (i32, i32) {
    %c0_i32 = arith.constant 0 : i32
    return %arg0, %arg1 : i32, i32
  }
  func.func @transform_1(%arg0: i32, %arg1: i32) -> (i32, i32) {
    %c0_i32 = arith.constant 0 : i32
    %c0_i32_0 = arith.constant 0 : i32
    return %arg0, %c0_i32 : i32, i32
  }
  func.func @transform_2(%arg0: i32, %arg1: i32) -> (i32, i32) {
    %c0_i32 = arith.constant 0 : i32
    %c0_i32_0 = arith.constant 0 : i32
    return %arg0, %c0_i32 : i32, i32
  }
  func.func @transform_3(%arg0: i32, %arg1: i32) -> (i32, i32) {
    %c0_i32 = arith.constant 0 : i32
    %c0_i32_0 = arith.constant 0 : i32
    return %arg0, %c0_i32 : i32, i32
  }
  func.func @transform_4(%arg0: i32, %arg1: i32) -> (i32, i32) {
    %c0_i32 = arith.constant 0 : i32
    return %arg0, %arg1 : i32, i32
  }
}

</mosaic_0001>

<bundles_post_ra>
// kernel: tpu_custom_call.1
= control target key start
LH: loop header
LB: loop body
LE: loop exit
PB: predicated region body
PF: predicated region fallthrough
CT: control target
= control target key end

     0   :  { %v94_v2 = vmov 0   ;;  %s139_s0 = inlined_call_operand.vmem [shape: f32[8,256], index: 0, kind: input, shape index: {}]   ;;  %s140_s1 = inlined_call_operand.vmem [shape: f32[8,1], index: 1, kind: input, shape index: {}]   ;;  %s141_s2 = inlined_call_operand.vmem [shape: f32[8,1], index: 2, kind: input, shape index: {}]   ;;  %s142_s3 = inlined_call_operand.vmem [shape: f32[8,1], index: 3, kind: input, shape index: {}]   ;;  %s143_s4 = inlined_call_operand.hbm [shape: f32[8,256], index: 4, kind: output, shape index: {}]  }
   0x1   :  { %v20_v0 = vld [vmem:[%s140_s1] sm:$0xff]  ;;  %66 = vset.pattern.permute.xlu0 %v94_v2  ;;  %67 = vset.pattern.permute.xlu1 %v94_v2 }
   0x2   :  { %v22_v1 = vld [vmem:[%s142_s3] sm:$0xff] }
   0x3   :  { %9 = vsyncpa [#allocation3], 0  ;;  %25 = vperm.xlu0 %66, %v20_v0   ;;  %41 = vperm.xlu1 %67, %v22_v1   ;;  %v21_v3 = vld [vmem:[%s141_s2] sm:$0xff]  ;;  %v19_v6 = vld [vmem:[%s139_s0 + $0x8] sm:$0xff]  ;;  %s95_s3 = smov [#allocation2]   ;;  %s55_s26 = sshll.u32 %s143_s4, 4  ;;  %s56_s26 = int_to_ptr.hbm [resolvable:$true] %s55_s26 }
   0x4   :  { %v18_v5 = vld [vmem:[%s139_s0] sm:$0xff]  ;;  %s53_s2 = sshll.u32 %s95_s3, 4  ;;  %s54_s2 = int_to_ptr.vmem [resolvable:$true] %s53_s2 }
   0xb   :  { %32 = vperm.xlu0 %66, %v21_v3  }
  0x75   :  { %v26_v4 = vpop.permute.xlu0 %25  ;;  %v42_v12 = vpop.permute.xlu1 %41 }
  0x76   :  { %v28_v7 = vmax.f32 %v26_v4, %v18_v5  ;;  %v29_v8 = vmax.f32 %v26_v4, %v19_v6 }
  0x7d   :  { %v33_v9 = vpop.permute.xlu0 %32 }
  0x7e   :  { %v35_v10 = vmin.f32 %v33_v9, %v28_v7  ;;  %v36_v11 = vmin.f32 %v33_v9, %v29_v8 }
  0x80   :  { %v37_v13 = vsub.f32 %v35_v10, %v26_v4  ;;  %v38_v14 = vsub.f32 %v36_v11, %v26_v4 }
  0x82   :  { %v44_v15 = vmul.f32 %v42_v12, %v37_v13  ;;  %v45_v16 = vmul.f32 %v42_v12, %v38_v14 }
  0x84   :  { %46 = vst [vmem:[#allocation2] sm:$0xff] %v44_v15 }
  0x85   :  { %47 = vst [vmem:[#allocation2 + $0x8] sm:$0xff] %v45_v16 }
  0x86   :  { %58 = dma.vmem_to_hbm [thread:$0]  %s54_s2, 256, %s56_s26, [#allocation3]  }
  0x87   :  { %92 = dma.done.wait [#allocation3], 256  }
  0x88   :  { %93 = vsyncadd [#allocation3], 4294967040 }
  0x89   :  { %63 = vsyncpa [#allocation3], 1 }

</bundles_post_ra>
